<compile_context>
chip_gen: v7x
topology: tpu7x:2x2x1
jax: 0.10.0
libtpu: 0.0.40
codegen_flags: <defaults>
</compile_context>

<pallas_src>
import jax
import jax.numpy as jnp
from jax.experimental import pallas as pl
from jax.experimental.pallas import tpu as pltpu


def _input_encoder_kernel(x_ref, mask_ref, o_ref):
    # x_ref:    (R, S, L)  -- R folded rows, full sentence axis, lane-dense L
    # mask_ref: (S, L)     -- shared mask; same block every grid step (resident)
    # o_ref:    (R, L)
    x = x_ref[...].astype(jnp.float32)
    m = mask_ref[...].astype(jnp.float32)          # broadcast over R (hoisted, no loop)
    w = x * m                                      # VPU elementwise
    o_ref[...] = jnp.sum(w, axis=1).astype(o_ref.dtype)   # XLU reduce over sentence axis


_LANE = 128
_X_BLOCK_BYTES = 8 * 1024 * 1024   # target size of one x input block (double-buffered)


def input_encoder(x, mask):
    """x: (B, M, S, E), mask: (S, E) -> (B, M, E) == sum(x * mask, axis=2)."""
    B, M, S, E = x.shape
    assert mask.shape == (S, E)
    N = B * M
    itemsize = jnp.dtype(x.dtype).itemsize

    # Fold G rows into the lane axis so the blocks' last dim is a multiple of 128.
    G = _LANE // E if (E < _LANE and _LANE % E == 0) else 1
    L = G * E                       # lane width seen by the kernel
    ng = -(-N // G)                 # number of folded "super rows"

    # Rows-per-block from a byte budget: large blocks amortize per-step overhead
    # and reach the HBM roofline while staying tiny relative to VMEM.
    row_bytes = S * L * itemsize
    rg = max(8, min(2048, (_X_BLOCK_BYTES // max(row_bytes, 1)) // 8 * 8))
    if ng <= rg:
        rg = ng                     # single block; full-dim block is always legal
        ng_pad = ng
    else:
        ng_pad = -(-ng // rg) * rg  # pad super-rows to a multiple of the block

    # Pad the row axis (zero rows contribute zero to the sum), then fold.
    xf = x.reshape(N, S, E)
    n_pad = ng_pad * G
    if n_pad != N:
        xf = jnp.pad(xf, ((0, n_pad - N), (0, 0), (0, 0)))
    if G > 1:
        # Layout plumbing only: present a lane-dense slab to the kernel.
        xk = xf.reshape(ng_pad, G, S, E).transpose(0, 2, 1, 3).reshape(ng_pad, S, L)
        mk = jnp.tile(mask, (1, G))                 # (S, G*E), mk[s, g*E+e] = mask[s, e]
    else:
        xk = xf.reshape(ng_pad, S, L)
        mk = mask

    grid = (ng_pad // rg,)

    # Keep the double-buffered working set well inside VMEM on every generation
    # (v7x: 64 MiB physical; v5e default scoped limit is only 16 MiB -> raise it).
    x_blk = rg * S * L * itemsize
    o_blk = rg * L * itemsize
    m_blk = S * L * jnp.dtype(mask.dtype).itemsize
    vmem_limit = max(32 * 1024 * 1024, 2 * (x_blk + o_blk) + m_blk + 4 * 1024 * 1024)

    out = pl.pallas_call(
        _input_encoder_kernel,
        out_shape=jax.ShapeDtypeStruct((ng_pad, L), x.dtype),
        grid_spec=pltpu.PrefetchScalarGridSpec(
            num_scalar_prefetch=0,
            grid=grid,
            in_specs=[
                pl.BlockSpec((rg, S, L), lambda i: (i, 0, 0)),   # batched, lane-dense x rows
                pl.BlockSpec((S, L), lambda i: (0, 0)),          # mask stays resident
            ],
            out_specs=pl.BlockSpec((rg, L), lambda i: (i, 0)),   # lane-dense output
        ),
        compiler_params=pltpu.CompilerParams(
            dimension_semantics=("parallel",),      # v7x: shard rows across the 2 TCs
            vmem_limit_bytes=int(vmem_limit),
        ),
    )(xk, mk)

    # Un-fold lanes back to rows and drop the padding.
    out = out.reshape(ng_pad * G, E)[:N]
    return out.reshape(B, M, E)


if __name__ == "__main__":
    # Small shapes consistent with the module's forward.
    batch, memory, sentence_size, embed_size = 2, 4, 8, 32

    key = jax.random.PRNGKey(0)
    x = jax.random.normal(
        key, (batch, memory, sentence_size, embed_size), dtype=jnp.float32
    )

    # Deterministic parameter init, matching nn.Parameter(...).fill_(1).
    mask = jnp.ones((sentence_size, embed_size), dtype=jnp.float32)

    out = jax.block_until_ready(input_encoder(x, mask))

    # Reference check (plain JAX).
    ref = jnp.sum(x * mask[None, None, :, :], axis=2)
    assert out.shape == (batch, memory, embed_size)
    assert jnp.allclose(out, ref, atol=1e-5, rtol=1e-5)

    print("KERNEL_OK")
</pallas_src>

<mosaic_0001>
module attributes {stable_mosaic.version = 11 : i64} {
  func.func @_input_encoder_kernel(%arg0: i32, %arg1: memref<2x8x128xf32, #tpu.memory_space<vmem>>, %arg2: memref<8x128xf32, #tpu.memory_space<vmem>>, %arg3: memref<2x128xf32, #tpu.memory_space<vmem>>) attributes {dimension_semantics = [#tpu.dimension_semantics<parallel>], iteration_bounds = array<i64: 1>, scalar_prefetch = 0 : i64, scratch_operands = 0 : i64, tpu.core_type = #tpu.core_type<tc>, window_params = [{transform_indices = @transform_0, window_bounds = array<i64: 2, 8, 128>}, {pipeline_mode = #tpu.pipeline_mode<synchronous>, transform_indices = @transform_1, window_bounds = array<i64: 8, 128>}, {transform_indices = @transform_2, window_bounds = array<i64: 2, 128>}]} {
    %c0 = arith.constant 0 : index
    %c0_0 = arith.constant 0 : index
    %c0_1 = arith.constant 0 : index
    %0 = vector.load %arg1[%c0, %c0_0, %c0_1] : memref<2x8x128xf32, #tpu.memory_space<vmem>>, vector<2x8x128xf32>
    %c0_2 = arith.constant 0 : index
    %c0_3 = arith.constant 0 : index
    %1 = vector.load %arg2[%c0_2, %c0_3] : memref<8x128xf32, #tpu.memory_space<vmem>>, vector<8x128xf32>
    %2 = vector.shape_cast %1 : vector<8x128xf32> to vector<1x8x128xf32>
    %3 = vector.broadcast %2 : vector<1x8x128xf32> to vector<2x8x128xf32>
    %4 = arith.mulf %0, %3 : vector<2x8x128xf32>
    %cst = arith.constant dense<0.000000e+00> : vector<2x128xf32>
    %5 = vector.multi_reduction <add>, %4, %cst [1] : vector<2x8x128xf32> to vector<2x128xf32>
    %c0_4 = arith.constant 0 : index
    %c0_5 = arith.constant 0 : index
    %6 = vector.load %arg3[%c0_4, %c0_5] : memref<2x128xf32, #tpu.memory_space<vmem>>, vector<2x128xf32>
    tpu.vector_store %arg3[%c0_4, %c0_5], %5 {strides = array<i32>} : memref<2x128xf32, #tpu.memory_space<vmem>>, vector<2x128xf32>,
    return
  }
  func.func @transform_0(%arg0: i32) -> (i32, i32, i32) {
    %c0_i32 = arith.constant 0 : i32
    %c0_i32_0 = arith.constant 0 : i32
    %c0_i32_1 = arith.constant 0 : i32
    return %arg0, %c0_i32, %c0_i32_0 : i32, i32, i32
  }
  func.func @transform_1(%arg0: i32) -> (i32, i32) {
    %c0_i32 = arith.constant 0 : i32
    %c0_i32_0 = arith.constant 0 : i32
    %c0_i32_1 = arith.constant 0 : i32
    return %c0_i32, %c0_i32_0 : i32, i32
  }
  func.func @transform_2(%arg0: i32) -> (i32, i32) {
    %c0_i32 = arith.constant 0 : i32
    %c0_i32_0 = arith.constant 0 : i32
    return %arg0, %c0_i32 : i32, i32
  }
}

</mosaic_0001>

<bundles_post_ra>
// kernel: tpu_custom_call.1
= control target key start
LH: loop header
LB: loop body
LE: loop exit
PB: predicated region body
PF: predicated region fallthrough
CT: control target
= control target key end

     0   :  { %7 = vsyncpa [#allocation3], 0  ;;  %s210_s0 = inlined_call_operand.hbm [shape: f32[2,8,128], index: 0, kind: input, shape index: {}]   ;;  %s211_s1 = inlined_call_operand.hbm [shape: f32[8,128], index: 1, kind: input, shape index: {}]   ;;  %s212_s2 = inlined_call_operand.hbm [shape: f32[2,128], index: 2, kind: output, shape index: {}]  }
   0x1   :  { %8 = vsyncpa [#allocation6], 0 }
   0x2   :  { %9 = vsyncpa [#allocation4], 0  ;;  %s154_s9 = smov [#allocation2]   ;;  %s82_s13 = scalar_lea.hbm %s210_s0, 256 }
   0x3   :  { %s15_s10 = sshll.u32 %s154_s9, 4  ;;  %p83_p0 = scmp.ne.s32.totalorder %s210_s0, %s82_s13  ;;  %s16_s10 = int_to_ptr.vmem [resolvable:$true] %s15_s10 }
   0x4   :  { %p86_p1 = scmp.lt.u32.totalorder %s82_s13, %s210_s0 }
   0x6   :  { %p88_p2 = pnand %p86_p1, %p83_p0 }
   0x8   :  { %91 = shalt.err (!%p88_p2)
}
   0x9   :  { %s92_s18 = scalar_lea.vmem %s16_s10, 256  ;;  %p97_p4 = scmp.lt.s32.totalorder %s16_s10, %s16_s10 }
   0xa   :  { %p93_p3 = scmp.ne.s32.totalorder %s16_s10, %s92_s18  ;;  %p98_p5 = scmp.lt.s32.totalorder %s92_s18, %s92_s18 }
   0xc   :  { %p99_p6 = por %p98_p5, %p97_p4 }
   0xe   :  { %p100_p7 = pnand %p99_p6, %p93_p3 }
  0x10   :  { %103 = shalt.err (!%p100_p7)
}
  0x11   :  { %s155_s19 = smov 128   ;;  %s156_s20 = smov 8  }
  0x12   :  { %21 = dma.hbm_to_vmem [thread:$0]  %s210_s0, 256, %s16_s10, [#allocation3], %s155_s19, %s155_s19, %s156_s20  }
  0x13   :  { %s157_s23 = smov [#allocation5]   ;;  %s104_s27 = scalar_lea.hbm %s211_s1, 128 }
  0x14   :  { %s28_s24 = sshll.u32 %s157_s23, 4  ;;  %p105_p8 = scmp.ne.s32.totalorder %s211_s1, %s104_s27  ;;  %s29_s24 = int_to_ptr.vmem [resolvable:$true] %s28_s24 }
  0x15   :  { %p108_p9 = scmp.lt.u32.totalorder %s104_s27, %s211_s1 }
  0x17   :  { %p110_p10 = pnand %p108_p9, %p105_p8 }
  0x19   :  { %113 = shalt.err (!%p110_p10)
}
  0x1a   :  { %s114_s4 = scalar_lea.vmem %s29_s24, 128  ;;  %p119_p12 = scmp.lt.s32.totalorder %s29_s24, %s29_s24 }
  0x1b   :  { %p115_p11 = scmp.ne.s32.totalorder %s29_s24, %s114_s4  ;;  %p120_p13 = scmp.lt.s32.totalorder %s114_s4, %s114_s4 }
  0x1d   :  { %p121_p0 = por %p120_p13, %p119_p12 }
  0x1f   :  { %p122_p1 = pnand %p121_p0, %p115_p11 }
  0x21   :  { %125 = shalt.err (!%p122_p1)
}
  0x22   :  { %31 = dma.hbm_to_vmem [thread:$0]  %s211_s1, 128, %s29_s24, [#allocation6]  }
  0x23   :  { %148 = dma.done.wait [#allocation3], 256  }
  0x24   :  { %149 = vsyncadd [#allocation3], 4294967040 }
  0x25   :  { %150 = dma.done.wait [#allocation6], 128  }
  0x26   :  { %151 = vsyncadd [#allocation6], 4294967168  ;;  %v38_v0 = vld [vmem:[#allocation2] sm:$0xff]  ;;  %v39_v1 = vld [vmem:[#allocation2 + $0x8] sm:$0xff]  ;;  %s158_s1 = smov [#allocation7]   ;;  %vm57_vm0 = vcmask 1041409  }
  0x27   :  { %v40_v2 = vld [vmem:[#allocation5] sm:$0xff]  ;;  %s67_s6 = sshll.u32 %s158_s1, 4  ;;  %s68_s6 = int_to_ptr.vmem [resolvable:$true] %s67_s6 }
  0x28   :  { %v41_v3 = vmul.f32 %v40_v2, %v38_v0  ;;  %v42_v4 = vmul.f32 %v40_v2, %v39_v1  ;;  %s126_s7 = scalar_lea.vmem %s68_s6, 32  ;;  %p131_p3 = scmp.lt.s32.totalorder %s68_s6, %s68_s6 }
  0x29   :  { %p127_p2 = scmp.ne.s32.totalorder %s68_s6, %s126_s7  ;;  %p132_p4 = scmp.lt.s32.totalorder %s126_s7, %s126_s7 }
  0x2a   :  { %v43_v5 = vrot.slane %v41_v3, 4  ;;  %v49_v6 = vrot.slane %v42_v4, 4 }
  0x2b   :  { %p133_p5 = por %p132_p4, %p131_p3 }
  0x2c   :  { %v44_v7 = vadd.f32 %v43_v5, %v41_v3  ;;  %v50_v8 = vadd.f32 %v49_v6, %v42_v4 }
  0x2d   :  { %p134_p6 = pnand %p133_p5, %p127_p2 }
  0x2e   :  { %v45_v9 = vrot.slane %v44_v7, 2  ;;  %v51_v10 = vrot.slane %v50_v8, 2 }
  0x30   :  { %v46_v11 = vadd.f32 %v45_v9, %v44_v7  ;;  %v52_v12 = vadd.f32 %v51_v10, %v50_v8 }
  0x32   :  { %v47_v13 = vrot.slane %v46_v11, 1  ;;  %v53_v14 = vrot.slane %v52_v12, 1 }
  0x34   :  { %v48_v15 = vadd.f32 %v47_v13, %v46_v11  ;;  %v54_v16 = vadd.f32 %v53_v14, %v52_v12 }
  0x36   :  { %v58_v17 = vsel %vm57_vm0, %v54_v16, %v48_v15 }
  0x37   :  { %60 = vst [vmem:[#allocation7] sm:$0x3] %v58_v17 }
  0x38   :  { %137 = shalt.err (!%p134_p6)
}
  0x39   :  { %s138_s10 = scalar_lea.hbm %s212_s2, 32 }
  0x3a   :  { %p139_p7 = scmp.ne.s32.totalorder %s212_s2, %s138_s10  ;;  %p142_p8 = scmp.lt.u32.totalorder %s138_s10, %s212_s2 }
  0x3c   :  { %p144_p9 = pnand %p142_p8, %p139_p7 }
  0x3e   :  { %147 = shalt.err (!%p144_p9)
}
  0x3f   :  { %70 = dma.vmem_to_hbm [thread:$0]  %s68_s6, 32, %s212_s2, [#allocation4]  }
  0x40   :  { %152 = dma.done.wait [#allocation4], 32  }
  0x41   :  { %153 = vsyncadd [#allocation4], 4294967264 }
  0x42   :  { %74 = vsyncpa [#allocation3], 1 }
  0x43   :  { %75 = vsyncpa [#allocation6], 1 }
  0x44   :  { %76 = vsyncpa [#allocation4], 1 }

</bundles_post_ra>
